<compile_context>
chip_gen: v7x
topology: tpu7x:2x2x1
jax: 0.10.0
libtpu: 0.0.40
codegen_flags: <defaults>
</compile_context>

<pallas_src>
import functools

import jax
import jax.numpy as jnp
from jax.experimental import pallas as pl
from jax.experimental.pallas import tpu as pltpu


def _mlp_kernel(x_ref, w1_ref, b1_ref, w2_ref, b2_ref,
                w3_ref, b3_ref, w4_ref, b4_ref, o_ref,
                *, matmul_dtype, elementwise_dtype):
    mm = matmul_dtype
    ed = elementwise_dtype

    x = x_ref[...].astype(mm)

    # fc1 + relu.  preferred_element_type=ed keeps the intermediate in bf16 on
    # v6e/v7x (bf16 VALU -> half the vregs per elementwise pass, no cast
    # passes); ed=f32 for v5e / exact checking.
    h = jnp.dot(x, w1_ref[...], preferred_element_type=ed) + b1_ref[...]
    h = jnp.maximum(h, 0.0)

    # dropout1 (p=0.2): identity in eval/inference mode.
    # TODO(synk): training-mode stochastic dropout (pltpu.prng_random_bits) not emitted.

    # fc2 + relu  (h.astype(mm) is a no-op when ed == mm)
    h = jnp.dot(h.astype(mm), w2_ref[...], preferred_element_type=ed) + b2_ref[...]
    h = jnp.maximum(h, 0.0)

    # fc3 + relu
    h = jnp.dot(h.astype(mm), w3_ref[...], preferred_element_type=ed) + b3_ref[...]
    h = jnp.maximum(h, 0.0)

    # fc4 (no activation): always accumulate the final logits in f32.  The
    # N=2 output is lane-sparse but a negligible share of FLOPs/stores.
    out = (jnp.dot(h.astype(mm), w4_ref[...], preferred_element_type=jnp.float32)
           + b4_ref[...])
    o_ref[...] = out.astype(o_ref.dtype)


def _round_up(v, m):
    return ((v + m - 1) // m) * m


def prepare_params(params, *, matmul_dtype=jnp.bfloat16,
                   elementwise_dtype=jnp.bfloat16):
    """Cast weights/biases once, OUTSIDE the jitted forward (removes per-call
    cast ops and keeps HBM weight traffic at the bf16 size every invocation).

    Weights -> matmul_dtype, b1..b3 -> elementwise_dtype, b4 -> f32.
    """
    p = {}
    for i in (1, 2, 3, 4):
        p[f"w{i}"] = params[f"w{i}"].astype(matmul_dtype)
    for i in (1, 2, 3):
        p[f"b{i}"] = params[f"b{i}"].astype(elementwise_dtype)
    p["b4"] = params["b4"].astype(jnp.float32)
    return p


def ann_model_forward(x, params, *, batch_tile=512,
                      matmul_dtype=jnp.bfloat16,
                      elementwise_dtype=jnp.bfloat16,
                      num_tensorcores=1,
                      dimension_semantics=("parallel",),
                      vmem_limit_bytes=32 * 1024 * 1024):
    """ANNModel forward pass as one Pallas TPU kernel.

    x:      [B, F] float32
    params: dict with w1..w4 ([in, out]) and b1..b4 ([1, out]); ideally already
            run through prepare_params (casts here are no-ops in that case).
    num_tensorcores: set to 2 on v7x so the grid is split across both cores
            (optionally pass dimension_semantics=(pltpu.CORE_PARALLEL,)).
    """
    B, F = x.shape
    out_dim = params["w4"].shape[1]

    # --- batch-tile selection -------------------------------------------------
    # Pick the number of grid steps first, then the tile, so the padded tail is
    # < 8 rows.  The tail (non-divisible) block is handled by Pallas partial
    # blocks: no jnp.pad, so x is never copied in HBM and no wasted tail work.
    # Only force extra grid steps when the chip has >1 TensorCore (v7x); on
    # v5e/v6e the grid is a serial loop, so keep one big tile when it fits.
    b8 = _round_up(B, 8)
    tile = max(8, min(_round_up(batch_tile, 8), b8))
    num_steps = pl.cdiv(b8, tile)
    if num_tensorcores > 1 and B > 8:
        # >= 2 steps per core so pipelining survives the core split.
        num_steps = max(num_steps, min(2 * num_tensorcores, b8 // 8))
    tile = _round_up(pl.cdiv(b8, num_steps), 8)
    grid = (pl.cdiv(B, tile),)

    # No-op casts if params were prepared with matching dtypes.
    w1 = params["w1"].astype(matmul_dtype)
    w2 = params["w2"].astype(matmul_dtype)
    w3 = params["w3"].astype(matmul_dtype)
    w4 = params["w4"].astype(matmul_dtype)
    b1 = params["b1"].astype(elementwise_dtype)
    b2 = params["b2"].astype(elementwise_dtype)
    b3 = params["b3"].astype(elementwise_dtype)
    b4 = params["b4"].astype(jnp.float32)

    def full_spec(arr):
        # Whole weight/bias resident in VMEM; constant block index so the
        # pipeline does not re-fetch it across grid steps.
        return pl.BlockSpec(arr.shape, lambda i: (0, 0))

    out = pl.pallas_call(
        functools.partial(_mlp_kernel,
                          matmul_dtype=matmul_dtype,
                          elementwise_dtype=elementwise_dtype),
        out_shape=jax.ShapeDtypeStruct((B, out_dim), x.dtype),
        grid_spec=pltpu.PrefetchScalarGridSpec(
            num_scalar_prefetch=0,
            grid=grid,
            in_specs=[
                pl.BlockSpec((tile, F), lambda i: (i, 0)),  # x tile
                full_spec(w1), full_spec(b1),
                full_spec(w2), full_spec(b2),
                full_spec(w3), full_spec(b3),
                full_spec(w4), full_spec(b4),
            ],
            out_specs=pl.BlockSpec((tile, out_dim), lambda i: (i, 0)),
        ),
        compiler_params=pltpu.CompilerParams(
            dimension_semantics=dimension_semantics,
            vmem_limit_bytes=vmem_limit_bytes,
        ),
    )(x, w1, b1, w2, b2, w3, b3, w4, b4)
    return out


def init_params(key, input_size):
    """Deterministic init matching nn.Linear shapes (uniform +/- 1/sqrt(fan_in))."""
    dims = [(input_size, 256), (256, 128), (128, 64), (64, 2)]
    params = {}
    for idx, (fan_in, fan_out) in enumerate(dims, start=1):
        key, kw, kb = jax.random.split(key, 3)
        bound = 1.0 / jnp.sqrt(jnp.asarray(fan_in, jnp.float32))
        params[f"w{idx}"] = jax.random.uniform(
            kw, (fan_in, fan_out), jnp.float32, -bound, bound)
        params[f"b{idx}"] = jax.random.uniform(
            kb, (1, fan_out), jnp.float32, -bound, bound)
    return params


def reference_forward(x, params):
    h = jnp.maximum(x @ params["w1"] + params["b1"], 0.0)
    h = jnp.maximum(h @ params["w2"] + params["b2"], 0.0)
    h = jnp.maximum(h @ params["w3"] + params["b3"], 0.0)
    return h @ params["w4"] + params["b4"]


if __name__ == "__main__":
    input_size = 32

    key = jax.random.PRNGKey(0)
    key, kx1, kx2 = jax.random.split(key, 3)
    params = init_params(key, input_size)

    # 1) Small batch, exact f32 matmul + f32 elementwise path (tight tolerance).
    x_small = jax.random.normal(kx1, (8, input_size), jnp.float32)
    params_f32 = prepare_params(params, matmul_dtype=jnp.float32,
                                elementwise_dtype=jnp.float32)
    fwd_f32 = jax.jit(functools.partial(
        ann_model_forward, batch_tile=512,
        matmul_dtype=jnp.float32, elementwise_dtype=jnp.float32))
    out_f32 = fwd_f32(x_small, params_f32)
    jax.block_until_ready(out_f32)
    ref_small = reference_forward(x_small, params)
    assert out_f32.shape == (8, 2), out_f32.shape
    assert jnp.allclose(out_f32, ref_small, atol=1e-4, rtol=1e-4), "f32 mismatch"

    # 2) Ragged batch, default bf16 matmul + bf16 elementwise path: exercises
    #    the multi-step grid with a partial tail block (no wrapper padding) and
    #    the bf16 MXU/VPU path (relaxed tolerance).
    x_big = jax.random.normal(kx2, (1000, input_size), jnp.float32)
    params_bf16 = prepare_params(params)  # bf16 weights + bf16 b1..b3, once
    fwd_bf16 = jax.jit(functools.partial(ann_model_forward, batch_tile=512))
    out_bf16 = fwd_bf16(x_big, params_bf16)
    jax.block_until_ready(out_bf16)
    ref_big = reference_forward(x_big, params)
    assert out_bf16.shape == (1000, 2), out_bf16.shape
    max_err = jnp.max(jnp.abs(out_bf16 - ref_big))
    assert max_err < 5e-2, f"bf16 mismatch, max abs err {max_err}"

    print("KERNEL_OK")
</pallas_src>

<mosaic_0001>
module attributes {stable_mosaic.version = 11 : i64} {
  func.func @_mlp_kernel(%arg0: i32, %arg1: memref<8x32xf32, #tpu.memory_space<vmem>>, %arg2: memref<32x256xf32, #tpu.memory_space<vmem>>, %arg3: memref<1x256xf32, #tpu.memory_space<vmem>>, %arg4: memref<256x128xf32, #tpu.memory_space<vmem>>, %arg5: memref<1x128xf32, #tpu.memory_space<vmem>>, %arg6: memref<128x64xf32, #tpu.memory_space<vmem>>, %arg7: memref<1x64xf32, #tpu.memory_space<vmem>>, %arg8: memref<64x2xf32, #tpu.memory_space<vmem>>, %arg9: memref<1x2xf32, #tpu.memory_space<vmem>>, %arg10: memref<8x2xf32, #tpu.memory_space<vmem>>) attributes {dimension_semantics = [#tpu.dimension_semantics<parallel>], iteration_bounds = array<i64: 1>, scalar_prefetch = 0 : i64, scratch_operands = 0 : i64, tpu.core_type = #tpu.core_type<tc>, window_params = [{transform_indices = @transform_0, window_bounds = array<i64: 8, 32>}, {pipeline_mode = #tpu.pipeline_mode<synchronous>, transform_indices = @transform_1, window_bounds = array<i64: 32, 256>}, {pipeline_mode = #tpu.pipeline_mode<synchronous>, transform_indices = @transform_2, window_bounds = array<i64: 1, 256>}, {pipeline_mode = #tpu.pipeline_mode<synchronous>, transform_indices = @transform_3, window_bounds = array<i64: 256, 128>}, {pipeline_mode = #tpu.pipeline_mode<synchronous>, transform_indices = @transform_4, window_bounds = array<i64: 1, 128>}, {pipeline_mode = #tpu.pipeline_mode<synchronous>, transform_indices = @transform_5, window_bounds = array<i64: 128, 64>}, {pipeline_mode = #tpu.pipeline_mode<synchronous>, transform_indices = @transform_6, window_bounds = array<i64: 1, 64>}, {pipeline_mode = #tpu.pipeline_mode<synchronous>, transform_indices = @transform_7, window_bounds = array<i64: 64, 2>}, {pipeline_mode = #tpu.pipeline_mode<synchronous>, transform_indices = @transform_8, window_bounds = array<i64: 1, 2>}, {transform_indices = @transform_9, window_bounds = array<i64: 8, 2>}]} {
    %c0 = arith.constant 0 : index
    %c0_0 = arith.constant 0 : index
    %0 = vector.load %arg1[%c0, %c0_0] : memref<8x32xf32, #tpu.memory_space<vmem>>, vector<8x32xf32>
    %c0_1 = arith.constant 0 : index
    %c0_2 = arith.constant 0 : index
    %1 = vector.load %arg2[%c0_1, %c0_2] : memref<32x256xf32, #tpu.memory_space<vmem>>, vector<32x256xf32>
    %cst = arith.constant dense<0.000000e+00> : vector<8x256xf32>
    %2 = tpu.matmul %0, %1, %cst {dimension_numbers = #tpu.dot_dimension_numbers<[1], [0], [0], [1], [0, 0, 1, 1], [], []>} : vector<8x32xf32>, vector<32x256xf32>, vector<8x256xf32> -> vector<8x256xf32>
    %c0_3 = arith.constant 0 : index
    %c0_4 = arith.constant 0 : index
    %3 = vector.load %arg3[%c0_3, %c0_4] : memref<1x256xf32, #tpu.memory_space<vmem>>, vector<1x256xf32>
    %4 = vector.broadcast %3 : vector<1x256xf32> to vector<8x256xf32>
    %5 = arith.addf %2, %4 : vector<8x256xf32>
    %cst_5 = arith.constant 0.000000e+00 : f32
    %6 = vector.broadcast %cst_5 : f32 to vector<8x256xf32>
    %7 = arith.maximumf %5, %6 : vector<8x256xf32>
    %c0_6 = arith.constant 0 : index
    %c0_7 = arith.constant 0 : index
    %8 = vector.load %arg4[%c0_6, %c0_7] : memref<256x128xf32, #tpu.memory_space<vmem>>, vector<256x128xf32>
    %cst_8 = arith.constant dense<0.000000e+00> : vector<8x128xf32>
    %9 = tpu.matmul %7, %8, %cst_8 {dimension_numbers = #tpu.dot_dimension_numbers<[1], [0], [0], [1], [0, 0, 1, 1], [], []>} : vector<8x256xf32>, vector<256x128xf32>, vector<8x128xf32> -> vector<8x128xf32>
    %c0_9 = arith.constant 0 : index
    %c0_10 = arith.constant 0 : index
    %10 = vector.load %arg5[%c0_9, %c0_10] : memref<1x128xf32, #tpu.memory_space<vmem>>, vector<1x128xf32>
    %11 = vector.broadcast %10 : vector<1x128xf32> to vector<8x128xf32>
    %12 = arith.addf %9, %11 : vector<8x128xf32>
    %cst_11 = arith.constant 0.000000e+00 : f32
    %13 = vector.broadcast %cst_11 : f32 to vector<8x128xf32>
    %14 = arith.maximumf %12, %13 : vector<8x128xf32>
    %c0_12 = arith.constant 0 : index
    %c0_13 = arith.constant 0 : index
    %15 = vector.load %arg6[%c0_12, %c0_13] : memref<128x64xf32, #tpu.memory_space<vmem>>, vector<128x64xf32>
    %cst_14 = arith.constant dense<0.000000e+00> : vector<8x64xf32>
    %16 = tpu.matmul %14, %15, %cst_14 {dimension_numbers = #tpu.dot_dimension_numbers<[1], [0], [0], [1], [0, 0, 1, 1], [], []>} : vector<8x128xf32>, vector<128x64xf32>, vector<8x64xf32> -> vector<8x64xf32>
    %c0_15 = arith.constant 0 : index
    %c0_16 = arith.constant 0 : index
    %17 = vector.load %arg7[%c0_15, %c0_16] : memref<1x64xf32, #tpu.memory_space<vmem>>, vector<1x64xf32>
    %18 = vector.broadcast %17 : vector<1x64xf32> to vector<8x64xf32>
    %19 = arith.addf %16, %18 : vector<8x64xf32>
    %cst_17 = arith.constant 0.000000e+00 : f32
    %20 = vector.broadcast %cst_17 : f32 to vector<8x64xf32>
    %21 = arith.maximumf %19, %20 : vector<8x64xf32>
    %c0_18 = arith.constant 0 : index
    %c0_19 = arith.constant 0 : index
    %22 = vector.load %arg8[%c0_18, %c0_19] : memref<64x2xf32, #tpu.memory_space<vmem>>, vector<64x2xf32>
    %cst_20 = arith.constant dense<0.000000e+00> : vector<8x2xf32>
    %23 = tpu.matmul %21, %22, %cst_20 {dimension_numbers = #tpu.dot_dimension_numbers<[1], [0], [0], [1], [0, 0, 1, 1], [], []>} : vector<8x64xf32>, vector<64x2xf32>, vector<8x2xf32> -> vector<8x2xf32>
    %c0_21 = arith.constant 0 : index
    %c0_22 = arith.constant 0 : index
    %24 = vector.load %arg9[%c0_21, %c0_22] : memref<1x2xf32, #tpu.memory_space<vmem>>, vector<1x2xf32>
    %25 = vector.broadcast %24 : vector<1x2xf32> to vector<8x2xf32>
    %26 = arith.addf %23, %25 : vector<8x2xf32>
    %c0_23 = arith.constant 0 : index
    %c0_24 = arith.constant 0 : index
    %27 = vector.load %arg10[%c0_23, %c0_24] : memref<8x2xf32, #tpu.memory_space<vmem>>, vector<8x2xf32>
    tpu.vector_store %arg10[%c0_23, %c0_24], %26 {strides = array<i32>} : memref<8x2xf32, #tpu.memory_space<vmem>>, vector<8x2xf32>,
    return
  }
  func.func @transform_0(%arg0: i32) -> (i32, i32) {
    %c0_i32 = arith.constant 0 : i32
    %c0_i32_0 = arith.constant 0 : i32
    return %arg0, %c0_i32 : i32, i32
  }
  func.func @transform_1(%arg0: i32) -> (i32, i32) {
    %c0_i32 = arith.constant 0 : i32
    %c0_i32_0 = arith.constant 0 : i32
    %c0_i32_1 = arith.constant 0 : i32
    return %c0_i32, %c0_i32_0 : i32, i32
  }
  func.func @transform_2(%arg0: i32) -> (i32, i32) {
    %c0_i32 = arith.constant 0 : i32
    %c0_i32_0 = arith.constant 0 : i32
    %c0_i32_1 = arith.constant 0 : i32
    return %c0_i32, %c0_i32_0 : i32, i32
  }
  func.func @transform_3(%arg0: i32) -> (i32, i32) {
    %c0_i32 = arith.constant 0 : i32
    %c0_i32_0 = arith.constant 0 : i32
    %c0_i32_1 = arith.constant 0 : i32
    return %c0_i32, %c0_i32_0 : i32, i32
  }
  func.func @transform_4(%arg0: i32) -> (i32, i32) {
    %c0_i32 = arith.constant 0 : i32
    %c0_i32_0 = arith.constant 0 : i32
    %c0_i32_1 = arith.constant 0 : i32
    return %c0_i32, %c0_i32_0 : i32, i32
  }
  func.func @transform_5(%arg0: i32) -> (i32, i32) {
    %c0_i32 = arith.constant 0 : i32
    %c0_i32_0 = arith.constant 0 : i32
    %c0_i32_1 = arith.constant 0 : i32
    return %c0_i32, %c0_i32_0 : i32, i32
  }
  func.func @transform_6(%arg0: i32) -> (i32, i32) {
    %c0_i32 = arith.constant 0 : i32
    %c0_i32_0 = arith.constant 0 : i32
    %c0_i32_1 = arith.constant 0 : i32
    return %c0_i32, %c0_i32_0 : i32, i32
  }
  func.func @transform_7(%arg0: i32) -> (i32, i32) {
    %c0_i32 = arith.constant 0 : i32
    %c0_i32_0 = arith.constant 0 : i32
    %c0_i32_1 = arith.constant 0 : i32
    return %c0_i32, %c0_i32_0 : i32, i32
  }
  func.func @transform_8(%arg0: i32) -> (i32, i32) {
    %c0_i32 = arith.constant 0 : i32
    %c0_i32_0 = arith.constant 0 : i32
    %c0_i32_1 = arith.constant 0 : i32
    return %c0_i32, %c0_i32_0 : i32, i32
  }
  func.func @transform_9(%arg0: i32) -> (i32, i32) {
    %c0_i32 = arith.constant 0 : i32
    %c0_i32_0 = arith.constant 0 : i32
    return %arg0, %c0_i32 : i32, i32
  }
}

</mosaic_0001>

<bundles_post_ra>
// kernel: ann_model_forward.1
= control target key start
LH: loop header
LB: loop body
LE: loop exit
PB: predicated region body
PF: predicated region fallthrough
CT: control target
= control target key end

     0   :  { %14 = vsyncpa [#allocation3], 0  ;;  %s670_s30 = smov [#allocation2]   ;;  %s939_s0 = inlined_call_operand.vmem [shape: f32[8,32], index: 0, kind: input, shape index: {}]   ;;  %s940_s1 = inlined_call_operand.hbm [shape: f32[32,256], index: 1, kind: input, shape index: {}]   ;;  %s941_s2 = inlined_call_operand.vmem [shape: f32[1,256], index: 2, kind: input, shape index: {}]   ;;  %s942_s3 = inlined_call_operand.vmem [shape: f32[256,128], index: 3, kind: input, shape index: {}]   ;;  %s943_s4 = inlined_call_operand.vmem [shape: f32[1,128], index: 4, kind: input, shape index: {}]   ;;  %s944_s5 = inlined_call_operand.vmem [shape: f32[128,64], index: 5, kind: input, shape index: {}]   ;;  %s945_s6 = inlined_call_operand.vmem [shape: f32[1,64], index: 6, kind: input, shape index: {}]   ;;  %s946_s7 = inlined_call_operand.vmem [shape: f32[64,2], index: 7, kind: input, shape index: {}]   ;;  %s947_s8 = inlined_call_operand.vmem [shape: f32[1,2], index: 8, kind: input, shape index: {}]   ;;  %s948_s9 = inlined_call_operand.vmem [shape: f32[8,2], index: 9, kind: output, shape index: {}]  }
   0x1   :  { %s22_s10 = sshll.u32 %s670_s30, 4  ;;  %s646_s13 = scalar_lea.hbm %s940_s1, 1024  ;;  %s23_s10 = int_to_ptr.vmem [resolvable:$true] %s22_s10 }
   0x2   :  { %p647_p0 = scmp.ne.s32.totalorder %s940_s1, %s646_s13  ;;  %p650_p1 = scmp.lt.u32.totalorder %s646_s13, %s940_s1 }
   0x4   :  { %p652_p2 = pnand %p650_p1, %p647_p0 }
   0x6   :  { %655 = shalt.err (!%p652_p2)
}
   0x7   :  { %s656_s18 = scalar_lea.vmem %s23_s10, 1024  ;;  %p661_p4 = scmp.lt.s32.totalorder %s23_s10, %s23_s10 }
   0x8   :  { %p657_p3 = scmp.ne.s32.totalorder %s23_s10, %s656_s18  ;;  %p662_p5 = scmp.lt.s32.totalorder %s656_s18, %s656_s18 }
   0xa   :  { %p663_p6 = por %p662_p5, %p661_p4 }
   0xc   :  { %p664_p7 = pnand %p663_p6, %p657_p3 }
   0xe   :  { %667 = shalt.err (!%p664_p7)
}
   0xf   :  { %s671_s19 = smov 256   ;;  %s672_s20 = smov 16  }
  0x10   :  { %28 = dma.hbm_to_vmem [thread:$0]  %s940_s1, 1024, %s23_s10, [#allocation3], %s671_s19, %s671_s19, %s672_s20  }
  0x11   :  { %668 = dma.done.wait [#allocation3], 1024  }
  0x12   :  { %669 = vsyncadd [#allocation3], 4294966272  ;;  %v673_v0 = vmov 0.0   ;;  %v48_v1 = vld [vmem:[#allocation2 + $0x8] sm:$0xff]  ;;  %v50_v2 = vld [vmem:[#allocation2 + $0x18] sm:$0xff]  ;;  %vm67_vm0 = vcmask 261120  }
  0x13   :  { %135 = vmatprep.mubr.f32.mxu0 %v673_v0  ;;  %v47_v3 = vld [vmem:[#allocation2] sm:$0xff]  ;;  %v564_v4 = vpack.c.bf16 %v50_v2, %v48_v1  ;;  %v49_v5 = vld [vmem:[#allocation2 + $0x10] sm:$0xff]  ;;  %v52_v6 = vld [vmem:[#allocation2 + $0x28] sm:$0xff]  ;;  %v674_v2 = vmov 0.0|0.0   ;;  %vm675_vm1 = vmmov 0   ;;  %vm363_vm2 = vcmask 523264  }
  0x14   :  { %v54_v7 = vld [vmem:[#allocation2 + $0x38] sm:$0xff]  ;;  %v566_v8 = vpack.c.bf16 %v49_v5, %v47_v3  ;;  %v51_v10 = vld [vmem:[#allocation2 + $0x20] sm:$0xff]  ;;  %v53_v11 = vld [vmem:[#allocation2 + $0x30] sm:$0xff]  ;;  %vm437_vm3 = vcmask 15360  }
  0x15   :  { %v568_v9 = vpack.c.bf16 %v54_v7, %v52_v6  ;;  %565 = vmatprep.subr.bf16.mxu0 %v564_v4  ;;  %v160_v12 = vld [vmem:[%s942_s3 + $0x80] sm:$0xff]  ;;  %v161_v13 = vld [vmem:[%s942_s3 + $0x88] sm:$0xff]  ;;  %v570_v15 = vpack.c.bf16 %v53_v11, %v51_v10  ;;  %v162_v18 = vld [vmem:[%s942_s3 + $0x90] sm:$0xff] }
  0x16   :  { %v144_v14 = vld [vmem:[%s942_s3] sm:$0xff]  ;;  %567 = vmatpush1.bf16.msra.mxu0 %v566_v8  ;;  %v572_v16 = vpack.c.bf16 %v161_v13, %v160_v12  ;;  %v145_v17 = vld [vmem:[%s942_s3 + $0x8] sm:$0xff]  ;;  %v163_v19 = vld [vmem:[%s942_s3 + $0x98] sm:$0xff] }
  0x17   :  { %569 = vmatprep.subr.bf16.mxu0 %v568_v9  ;;  %v574_v20 = vpack.c.bf16 %v145_v17, %v144_v14  ;;  %v576_v21 = vpack.c.bf16 %v163_v19, %v162_v18  ;;  %v146_v22 = vld [vmem:[%s942_s3 + $0x10] sm:$0xff]  ;;  %v147_v23 = vld [vmem:[%s942_s3 + $0x18] sm:$0xff]  ;;  %v164_v24 = vld [vmem:[%s942_s3 + $0xa0] sm:$0xff]  ;;  %v57_v18 = vlaneseq }
  0x18   :  { %573 = vmatprep.subr.bf16.mxu1 %v572_v16  ;;  %v165_v25 = vld [vmem:[%s942_s3 + $0xa8] sm:$0xff]  ;;  %v578_v26 = vpack.c.bf16 %v147_v23, %v146_v22  ;;  %v46_v27 = vld [vmem:[%s939_s0] sm:$0xff]  ;;  %v166_v31 = vld [vmem:[%s942_s3 + $0xb0] sm:$0xff] }
  0x19   :  { %575 = vmatpush3.bf16.msra.mxu1 %v574_v20  ;;  %v580_v28 = vpack.c.bf16 %v165_v25, %v164_v24  ;;  %v148_v29 = vld [vmem:[%s942_s3 + $0x20] sm:$0xff]  ;;  %v149_v30 = vld [vmem:[%s942_s3 + $0x28] sm:$0xff]  ;;  %v167_v32 = vld [vmem:[%s942_s3 + $0xb8] sm:$0xff]  ;;  %v58_v19 = vshrl.u32 %v57_v18, 7 }
  0x1a   :  { %571 = vmatpush1.bf16.msra.mxu0 %v570_v15  ;;  %577 = vmatprep.subr.bf16.mxu1 %v576_v21  ;;  %v582_v33 = vpack.c.bf16 %v149_v30, %v148_v29  ;;  %v584_v34 = vpack.c.bf16 %v167_v32, %v166_v31  ;;  %v150_v35 = vld [vmem:[%s942_s3 + $0x30] sm:$0xff]  ;;  %v151_v36 = vld [vmem:[%s942_s3 + $0x38] sm:$0xff]  ;;  %v168_v37 = vld [vmem:[%s942_s3 + $0xc0] sm:$0xff] }
  0x1b   :  { %v169_v38 = vld [vmem:[%s942_s3 + $0xc8] sm:$0xff]  ;;  %v586_v39 = vpack.c.bf16 %v151_v36, %v150_v35  ;;  %v152_v41 = vld [vmem:[%s942_s3 + $0x40] sm:$0xff]  ;;  %v170_v43 = vld [vmem:[%s942_s3 + $0xd0] sm:$0xff]  ;;  %604 = vmatprep.subr.bf16.mxu0 %v674_v2  ;;  %v59_v20 = vsub.s32 0, %v58_v19  ;;  %v63_v22 = vsub.s32 1, %v58_v19 }
  0x1c   :  { %v588_v40 = vpack.c.bf16 %v169_v38, %v168_v37  ;;  %v153_v42 = vld [vmem:[%s942_s3 + $0x48] sm:$0xff]  ;;  %v171_v44 = vld [vmem:[%s942_s3 + $0xd8] sm:$0xff]  ;;  %v154_v47 = vld [vmem:[%s942_s3 + $0x50] sm:$0xff] }
  0x1d   :  { %444 = vmatmul.mubr.msk.f32.vlgmr.msra.gmra.mrb[0].mxu0 %vm67_vm0, %v46_v27  ;;  %579 = vmatpush3.bf16.msra.mxu1 %v578_v26  ;;  %v590_v45 = vpack.c.bf16 %v153_v42, %v152_v41  ;;  %v592_v46 = vpack.c.bf16 %v171_v44, %v170_v43  ;;  %v155_v48 = vld [vmem:[%s942_s3 + $0x58] sm:$0xff]  ;;  %v172_v49 = vld [vmem:[%s942_s3 + $0xe0] sm:$0xff]  ;;  %v173_v50 = vld [vmem:[%s942_s3 + $0xe8] sm:$0xff] }
  0x1e   :  { %581 = vmatprep.subr.bf16.mxu1 %v580_v28  ;;  %v594_v51 = vpack.c.bf16 %v155_v48, %v154_v47  ;;  %v596_v52 = vpack.c.bf16 %v173_v50, %v172_v49  ;;  %v156_v53 = vld [vmem:[%s942_s3 + $0x60] sm:$0xff]  ;;  %v157_v54 = vld [vmem:[%s942_s3 + $0x68] sm:$0xff]  ;;  %v174_v56 = vld [vmem:[%s942_s3 + $0xf0] sm:$0xff]  ;;  %542 = vmatprep.mubr.msk.f32.mxu0 %vm675_vm1, %v673_v0 }
  0x1f   :  { %v598_v55 = vpack.c.bf16 %v157_v54, %v156_v53  ;;  %v175_v57 = vld [vmem:[%s942_s3 + $0xf8] sm:$0xff]  ;;  %v158_v59 = vld [vmem:[%s942_s3 + $0x70] sm:$0xff]  ;;  %v254_v62 = vld [vmem:[%s944_s5] sm:$0xff] }
  0x20   :  { %v600_v58 = vpack.c.bf16 %v175_v57, %v174_v56  ;;  %v159_v60 = vld [vmem:[%s942_s3 + $0x78] sm:$0xff]  ;;  %v255_v63 = vld [vmem:[%s944_s5 + $0x8] sm:$0xff]  ;;  %v256_v1 = vld [vmem:[%s944_s5 + $0x10] sm:$0xff] }
  0x21   :  { %583 = vmatpush3.bf16.msra.mxu1 %v582_v33  ;;  %v602_v61 = vpack.c.bf16 %v159_v60, %v158_v59  ;;  %v605_v3 = vpack.c.bf16 %v255_v63, %v254_v62  ;;  %v257_v4 = vld [vmem:[%s944_s5 + $0x18] sm:$0xff]  ;;  %v258_v6 = vld [vmem:[%s944_s5 + $0x20] sm:$0xff]  ;;  %v259_v7 = vld [vmem:[%s944_s5 + $0x28] sm:$0xff] }
  0x22   :  { %585 = vmatprep.subr.bf16.mxu1 %v584_v34  ;;  %v608_v5 = vpack.c.bf16 %v257_v4, %v256_v1  ;;  %v611_v8 = vpack.c.bf16 %v259_v7, %v258_v6  ;;  %v260_v9 = vld [vmem:[%s944_s5 + $0x30] sm:$0xff]  ;;  %v261_v10 = vld [vmem:[%s944_s5 + $0x38] sm:$0xff]  ;;  %v262_v12 = vld [vmem:[%s944_s5 + $0x40] sm:$0xff] }
  0x23   :  { %606 = vmatpush3.bf16.msra.mxu0 %v605_v3  ;;  %v614_v11 = vpack.c.bf16 %v261_v10, %v260_v9  ;;  %v263_v13 = vld [vmem:[%s944_s5 + $0x48] sm:$0xff]  ;;  %v264_v15 = vld [vmem:[%s944_s5 + $0x50] sm:$0xff]  ;;  %v265_v16 = vld [vmem:[%s944_s5 + $0x58] sm:$0xff] }
  0x24   :  { %607 = vmatprep.subr.bf16.mxu0 %v674_v2  ;;  %v617_v14 = vpack.c.bf16 %v263_v13, %v262_v12  ;;  %v620_v17 = vpack.c.bf16 %v265_v16, %v264_v15  ;;  %v55_v21 = vld [vmem:[%s941_s2] sm:$0x3]  ;;  %v267_v32 = vld [vmem:[%s944_s5 + $0x68] sm:$0xff]  ;;  %v268_v34 = vld [vmem:[%s944_s5 + $0x70] sm:$0xff] }
  0x25   :  { %587 = vmatpush3.bf16.msra.mxu1 %v586_v39  ;;  %v60_v23 = vrot.slane %v55_v21, %v59_v20  ;;  %v64_v24 = vrot.slane %v55_v21, %v63_v22  ;;  %v266_v31 = vld [vmem:[%s944_s5 + $0x60] sm:$0xff]  ;;  %v269_v35 = vld [vmem:[%s944_s5 + $0x78] sm:$0xff]  ;;  %v349_v38 = vld [vmem:[%s946_s7 + $0x8] sm:$0xff] }
  0x26   :  { %589 = vmatprep.subr.bf16.mxu1 %v588_v40  ;;  %v623_v33 = vpack.c.bf16 %v267_v32, %v266_v31  ;;  %v626_v36 = vpack.c.bf16 %v269_v35, %v268_v34  ;;  %v348_v37 = vld [vmem:[%s946_s7] sm:$0xff]  ;;  %v350_v39 = vld [vmem:[%s946_s7 + $0x10] sm:$0xff]  ;;  %v351_v41 = vld [vmem:[%s946_s7 + $0x18] sm:$0xff] }
  0x27   :  { %609 = vmatpush3.bf16.msra.mxu0 %v608_v5  ;;  %v629_v40 = vpack.c.bf16 %v349_v38, %v348_v37  ;;  %v632_v42 = vpack.c.bf16 %v351_v41, %v350_v39  ;;  %v353_v43 = vld [vmem:[%s946_s7 + $0x28] sm:$0xff]  ;;  %v446_v54 = vld [vmem:[%s945_s6] ss:$0 sm:$0xff] }
  0x28   :  { %610 = vmatprep.subr.bf16.mxu0 %v674_v2  ;;  %v447_v59 = vld [vmem:[%s947_s8] ss:$0 sm:$0xff] }
  0x29   :  { %591 = vmatpush3.bf16.msra.mxu1 %v590_v45 }
  0x2a   :  { %593 = vmatprep.subr.bf16.mxu1 %v592_v46  ;;  %v445_v46 = vld [vmem:[%s943_s4] ss:$0 sm:$0xff] }
  0x2b   :  { %612 = vmatpush3.bf16.msra.mxu0 %v611_v8 }
  0x2c   :  { %613 = vmatprep.subr.bf16.mxu0 %v674_v2 }
  0x2d   :  { %595 = vmatpush3.bf16.msra.mxu1 %v594_v51  ;;  %v354_v51 = vld [vmem:[%s946_s7 + $0x30] sm:$0xff] }
  0x2e   :  { %597 = vmatprep.subr.bf16.mxu1 %v596_v52  ;;  %v355_v52 = vld [vmem:[%s946_s7 + $0x38] sm:$0xff] }
  0x2f   :  { %615 = vmatpush3.bf16.msra.mxu0 %v614_v11  ;;  %v638_v53 = vpack.c.bf16 %v355_v52, %v354_v51 }
  0x30   :  { %616 = vmatprep.subr.bf16.mxu0 %v674_v2 }
  0x31   :  { %599 = vmatpush3.bf16.msra.mxu1 %v598_v55 }
  0x32   :  { %601 = vmatprep.subr.bf16.mxu1 %v600_v58 }
  0x33   :  { %618 = vmatpush3.bf16.msra.mxu0 %v617_v14 }
  0x34   :  { %619 = vmatprep.subr.bf16.mxu0 %v674_v2 }
  0x35   :  { %603 = vmatpush3.bf16.msra.mxu1 %v602_v61 }
  0x36   :  { %628 = vmatprep.subr.bf16.mxu1 %v674_v2 }
  0x37   :  { %621 = vmatpush3.bf16.msra.mxu0 %v620_v17 }
  0x38   :  { %622 = vmatprep.subr.bf16.mxu0 %v674_v2 }
  0x3b   :  { %624 = vmatpush3.bf16.msra.mxu0 %v623_v33 }
  0x3c   :  { %625 = vmatprep.subr.bf16.mxu0 %v674_v2 }
  0x3f   :  { %627 = vmatpush3.bf16.msra.mxu0 %v626_v36 }
  0xf0   :  { %v137_v25 = vpop.f32.mrb[0].mxu0 }
  0xf1   :  { %v138_v26 = vadd.f32 %v137_v25, %v60_v23  ;;  %v139_v27 = vpop.f32.mrb[1].mxu0 }
  0xf2   :  { %v140_v28 = vadd.f32 %v139_v27, %v64_v24 }
  0xf3   :  { %v142_v30 = vmax.f32 %v138_v26, 0.0 }
  0xf4   :  { %v143_v29 = vmax.f32 %v140_v28, 0.0 }
  0xf6   :  { %247 = vmatprep.mubr.f32.mxu1 %v143_v29 }
  0xf7   :  { %248 = vmatmul.mubr.f32.vlgmr.msra.gmra.mrb[0].mxu1 %v142_v30 }
  0xf8   :  { %561 = vmatprep.mubr.msk.f32.mxu1 %vm675_vm1, %v673_v0  ;;  %630 = vmatpush3.bf16.msra.mxu1 %v629_v40  ;;  %v352_v0 = vld [vmem:[%s946_s7 + $0x20] sm:$0xff] }
  0xf9   :  { %631 = vmatprep.subr.bf16.mxu1 %v674_v2  ;;  %v635_v44 = vpack.c.bf16 %v353_v43, %v352_v0 }
  0xfc   :  { %633 = vmatpush3.bf16.msra.mxu1 %v632_v42 }
  0xfd   :  { %634 = vmatprep.subr.bf16.mxu1 %v674_v2 }
 0x100   :  { %636 = vmatpush3.bf16.msra.mxu1 %v635_v44 }
 0x101   :  { %637 = vmatprep.subr.bf16.mxu1 %v674_v2 }
 0x104   :  { %639 = vmatpush3.bf16.msra.mxu1 %v638_v53 }
 0x1ca   :  { %v481_v45 = vpop.f32.mrb[0].mxu1 }
 0x1cb   :  { %v482_v47 = vpop.f32.mrb[1].mxu1 }
 0x1cc   :  { %v483_v48 = vadd.f32 %v482_v47, %v481_v45 }
 0x1ce   :  { %v250_v49 = vadd.f32 %v483_v48, %v445_v46 }
 0x1d0   :  { %v253_v50 = vmax.f32 %v250_v49, 0.0 }
 0x1d2   :  { %543 = vmatmul.mubr.f32.vlgmr.msra.gmra.mrb[2].mxu0 %v253_v50 }
 0x2a5   :  { %v343_v55 = vpop.f32.mrb[2].mxu0 }
 0x2a6   :  { %v344_v56 = vadd.f32 %v446_v54, %v343_v55  ;;  %v544_v57 = vpop.f32.mrb[3].mxu0 }
 0x2a8   :  { %v347_v58 = vmax.f32 %v344_v56, 0.0 }
 0x2aa   :  { %562 = vmatmul.mubr.msk.f32.vlgmr.msra.gmra.mrb[2].mxu1 %vm363_vm2, %v347_v58 }
 0x37d   :  { %v433_v60 = vpop.f32.mrb[2].mxu1 }
 0x37e   :  { %v434_v61 = vadd.f32 %v447_v59, %v433_v60  ;;  %v563_v62 = vpop.f32.mrb[3].mxu1 }
 0x380   :  { %438 = vst.msk [vmem:[%s948_s9] sm:$0xff] %vm437_vm3, %v434_v61 }
 0x381   :  { %443 = vsyncpa [#allocation3], 1 }

</bundles_post_ra>
